<compile_context>
chip_gen: v7x
topology: tpu7x:2x2x1
jax: 0.10.0
libtpu: 0.0.40
codegen_flags: <defaults>
</compile_context>

<pallas_src>
import functools
import math

import jax
import jax.numpy as jnp
from jax.experimental import pallas as pl
from jax.experimental.pallas import tpu as pltpu


def _geglu_kernel(x_ref, o_ref, *, d, compute_dtype):
    # x_ref: (tm, 2*d) row slab laid out as [x1 | x2]; o_ref: (tm, d).
    # Static slices; when d % 128 == 0 they are lane-aligned views.
    x1 = x_ref[:, :d].astype(compute_dtype)
    x2 = x_ref[:, d:].astype(compute_dtype)
    # Exact (erf) GELU — matches torch.nn.functional.gelu default.
    # erf runs on the EUP (its own bundle slot), off the VALU critical path.
    gelu = 0.5 * x2 * (1.0 + jax.lax.erf(x2 * 0.7071067811865476))
    o_ref[...] = (x1 * gelu).astype(o_ref.dtype)


def geglu_pallas(x, *, tile_m=None, vmem_budget_bytes=24 * 1024 * 1024,
                 compute_dtype=None):
    """GEGLU: x (..., 2*D) -> x[..., :D] * gelu(x[..., D:]) of shape (..., D)."""
    feat = x.shape[-1]
    if feat % 2:
        raise ValueError("GEGLU requires an even last dimension")
    D = feat // 2
    lead = x.shape[:-1]
    M = math.prod(lead) if lead else 1
    x2d = x.reshape(M, feat)                  # free: collapses leading dims only
    itemsize = x2d.dtype.itemsize

    # dtype-aware sublane alignment: f32 -> 8 rows, bf16 -> 16, int8/fp8 -> 32.
    sub = max(8, 8 * (4 // itemsize))

    # ---- row (sublane) tile: grow toward a ~2 MiB input slab ---------------
    if tile_m is None:
        tile_m = (2 * 1024 * 1024) // (2 * D * itemsize)            # block target
        tile_m = min(tile_m, vmem_budget_bytes // (6 * D * itemsize))  # 2x(in+out)
        tile_m = max(tile_m, sub)
    if tile_m >= M or M <= sub:
        tm = M                                # full row dim: any M is legal
    else:
        tm = max(sub, (min(tile_m, M) // sub) * sub)
        tm = min(tm, M)

    # Ragged last row block: no padding, no post-slice.  Pallas masks the
    # out-of-range writes; out-of-range reads are don't-care garbage.
    grid = (pl.cdiv(M, tm),)

    in_specs = [pl.BlockSpec((tm, 2 * D), lambda i: (i, 0))]
    out_spec = pl.BlockSpec((tm, D), lambda i: (i, 0))

    # Double-buffered in+out blocks actually live in VMEM per step.
    live_bytes = 2 * (tm * 2 * D + tm * D) * itemsize
    vmem_limit = int(max(min(32 * 1024 * 1024, 3 * live_bytes),
                         live_bytes + 2 * 1024 * 1024,
                         16 * 1024 * 1024))
    # TODO(synk): if a single sub-row slab alone exceeded ~32 MiB (D beyond
    # ~175K at f32) add lane tiling; realistic GEGLU widths never get there.

    cdt = jnp.dtype(compute_dtype) if compute_dtype is not None else jnp.float32

    cost = pl.CostEstimate(
        flops=8 * M * D,
        transcendentals=M * D,
        bytes_accessed=(M * 2 * D + M * D) * itemsize,
    )

    out = pl.pallas_call(
        functools.partial(_geglu_kernel, d=D, compute_dtype=cdt),
        out_shape=jax.ShapeDtypeStruct((M, D), x.dtype),
        grid_spec=pltpu.PrefetchScalarGridSpec(
            num_scalar_prefetch=0,
            grid=grid,
            in_specs=in_specs,
            out_specs=out_spec,
        ),
        compiler_params=pltpu.CompilerParams(
            dimension_semantics=("parallel",),   # v7x: 2 TCs split the row blocks
            vmem_limit_bytes=vmem_limit,
        ),
        cost_estimate=cost,
    )(x2d)

    return out.reshape(*lead, D)


def _geglu_ref(x):
    d = x.shape[-1] // 2
    return x[..., :d] * jax.nn.gelu(x[..., d:], approximate=False)


if __name__ == "__main__":
    key = jax.random.PRNGKey(0)

    # (batch, seq, 2*D) ChatGLM-style GEGLU input.
    batch, seq, feat = 2, 8, 256
    x = jax.random.normal(key, (batch, seq, feat), jnp.float32)
    out = jax.block_until_ready(geglu_pallas(x))
    ref = _geglu_ref(x)
    assert out.shape == (batch, seq, feat // 2), out.shape
    assert jnp.allclose(out, ref, atol=1e-5, rtol=1e-5)

    # Ragged row blocks: M=400 is not a multiple of tile_m=64 — no pad / slice.
    x_big = jax.random.normal(jax.random.PRNGKey(1), (4, 100, 256), jnp.float32)
    out_big = jax.block_until_ready(geglu_pallas(x_big, tile_m=64))
    assert jnp.allclose(out_big, _geglu_ref(x_big), atol=1e-5, rtol=1e-5)

    # Non-128-aligned half width (D=20): same zero-copy path, in-kernel split.
    x_odd = jax.random.normal(jax.random.PRNGKey(2), (2, 8, 40), jnp.float32)
    out_odd = jax.block_until_ready(geglu_pallas(x_odd))
    assert jnp.allclose(out_odd, _geglu_ref(x_odd), atol=1e-5, rtol=1e-5)

    # bf16 input: dtype-aware (16-row) sublane alignment, f32 math inside.
    x_bf = jax.random.normal(jax.random.PRNGKey(3), (4, 64, 512), jnp.bfloat16)
    out_bf = jax.block_until_ready(geglu_pallas(x_bf, tile_m=32))
    ref_bf = _geglu_ref(x_bf.astype(jnp.float32))
    assert out_bf.dtype == jnp.bfloat16
    assert jnp.allclose(out_bf.astype(jnp.float32), ref_bf, atol=2e-2, rtol=2e-2)

    print("KERNEL_OK")
</pallas_src>

<mosaic_0001>
module attributes {stable_mosaic.version = 11 : i64} {
  func.func @_geglu_kernel(%arg0: i32, %arg1: memref<16x256xf32, #tpu.memory_space<vmem>>, %arg2: memref<16x128xf32, #tpu.memory_space<vmem>>) attributes {dimension_semantics = [#tpu.dimension_semantics<parallel>], iteration_bounds = array<i64: 1>, scalar_prefetch = 0 : i64, scratch_operands = 0 : i64, tpu.core_type = #tpu.core_type<tc>, window_params = [{transform_indices = @transform_0, window_bounds = array<i64: 16, 256>}, {transform_indices = @transform_1, window_bounds = array<i64: 16, 128>}]} {
    %c0 = arith.constant 0 : index
    %c0_0 = arith.constant 0 : index
    %0 = vector.load %arg1[%c0, %c0_0] : memref<16x256xf32, #tpu.memory_space<vmem>>, vector<16x128xf32>
    %c0_1 = arith.constant 0 : index
    %c128 = arith.constant 128 : index
    %1 = vector.load %arg1[%c0_1, %c128] : memref<16x256xf32, #tpu.memory_space<vmem>>, vector<16x128xf32>
    %cst = arith.constant 5.000000e-01 : f32
    %2 = vector.broadcast %cst : f32 to vector<16x128xf32>
    %3 = arith.mulf %2, %1 : vector<16x128xf32>
    %cst_2 = arith.constant 0.707106769 : f32
    %4 = vector.broadcast %cst_2 : f32 to vector<16x128xf32>
    %5 = arith.mulf %1, %4 : vector<16x128xf32>
    %6 = math.erf %5 : vector<16x128xf32>
    %cst_3 = arith.constant 1.000000e+00 : f32
    %7 = vector.broadcast %cst_3 : f32 to vector<16x128xf32>
    %8 = arith.addf %7, %6 : vector<16x128xf32>
    %9 = arith.mulf %3, %8 : vector<16x128xf32>
    %10 = arith.mulf %0, %9 : vector<16x128xf32>
    %c0_4 = arith.constant 0 : index
    %c0_5 = arith.constant 0 : index
    %11 = vector.load %arg2[%c0_4, %c0_5] : memref<16x128xf32, #tpu.memory_space<vmem>>, vector<16x128xf32>
    tpu.vector_store %arg2[%c0_4, %c0_5], %10 {strides = array<i32>} : memref<16x128xf32, #tpu.memory_space<vmem>>, vector<16x128xf32>,
    return
  }
  func.func @transform_0(%arg0: i32) -> (i32, i32) {
    %c0_i32 = arith.constant 0 : i32
    %c0_i32_0 = arith.constant 0 : i32
    return %arg0, %c0_i32 : i32, i32
  }
  func.func @transform_1(%arg0: i32) -> (i32, i32) {
    %c0_i32 = arith.constant 0 : i32
    %c0_i32_0 = arith.constant 0 : i32
    return %arg0, %c0_i32 : i32, i32
  }
}

</mosaic_0001>

<bundles_post_ra>
// kernel: tpu_custom_call.1
= control target key start
LH: loop header
LB: loop body
LE: loop exit
PB: predicated region body
PF: predicated region fallthrough
CT: control target
= control target key end

     0   :  { %6 = vsyncpa [#allocation3], 0  ;;  %s156_s0 = inlined_call_operand.hbm [shape: f32[16,256], index: 0, kind: input, shape index: {}]   ;;  %s157_s1 = inlined_call_operand.hbm [shape: f32[16,128], index: 1, kind: output, shape index: {}]  }
   0x1   :  { %7 = vsyncpa [#allocation4], 0  ;;  %s116_s6 = smov [#allocation2]   ;;  %s68_s10 = scalar_lea.hbm %s156_s0, 512 }
   0x2   :  { %s13_s7 = sshll.u32 %s116_s6, 4  ;;  %p69_p0 = scmp.ne.s32.totalorder %s156_s0, %s68_s10  ;;  %s14_s7 = int_to_ptr.vmem [resolvable:$true] %s13_s7 }
   0x3   :  { %p72_p1 = scmp.lt.u32.totalorder %s68_s10, %s156_s0 }
   0x5   :  { %p74_p2 = pnand %p72_p1, %p69_p0 }
   0x7   :  { %77 = shalt.err (!%p74_p2)
}
   0x8   :  { %s78_s15 = scalar_lea.vmem %s14_s7, 512  ;;  %p83_p4 = scmp.lt.s32.totalorder %s14_s7, %s14_s7 }
   0x9   :  { %p79_p3 = scmp.ne.s32.totalorder %s14_s7, %s78_s15  ;;  %p84_p5 = scmp.lt.s32.totalorder %s78_s15, %s78_s15 }
   0xb   :  { %p85_p6 = por %p84_p5, %p83_p4 }
   0xd   :  { %p86_p7 = pnand %p85_p6, %p79_p3 }
   0xf   :  { %89 = shalt.err (!%p86_p7)
}
  0x10   :  { %s117_s16 = smov 256   ;;  %s118_s17 = smov 16  }
  0x11   :  { %19 = dma.hbm_to_vmem [thread:$0]  %s156_s0, 512, %s14_s7, [#allocation3], %s117_s16, %s117_s16, %s118_s17  }
  0x12   :  { %112 = dma.done.wait [#allocation3], 512  }
  0x13   :  { %113 = vsyncadd [#allocation3], 4294966784  ;;  %v25_v0 = vld [vmem:[#allocation2 + $0x8] sm:$0xff]  ;;  %v26_v2 = vld [vmem:[#allocation2 + $0x18] sm:$0xff]  ;;  %s119_s20 = smov [#allocation5]  }
  0x14   :  { %v29_v1 = vmul.f32 0.70710677, %v25_v0  ;;  %v30_v3 = vmul.f32 0.70710677, %v26_v2  ;;  %v27_v4 = vmul.f32 0.5, %v25_v0  ;;  %v28_v6 = vmul.f32 0.5, %v26_v2 }
  0x15   :  { %v23_v9 = vld [vmem:[#allocation2] sm:$0xff]  ;;  %v24_v12 = vld [vmem:[#allocation2 + $0x10] sm:$0xff]  ;;  %s46_s21 = sshll.u32 %s119_s20, 4  ;;  %s47_s21 = int_to_ptr.vmem [resolvable:$true] %s46_s21 }
  0x16   :  { %64 = verf.f32 %v29_v1  ;;  %s90_s0 = scalar_lea.vmem %s47_s21, 256  ;;  %p95_p9 = scmp.lt.s32.totalorder %s47_s21, %s47_s21 }
  0x17   :  { %66 = verf.f32 %v30_v3  ;;  %p91_p8 = scmp.ne.s32.totalorder %s47_s21, %s90_s0  ;;  %p96_p10 = scmp.lt.s32.totalorder %s90_s0, %s90_s0 }
  0x19   :  { %p97_p11 = por %p96_p10, %p95_p9 }
  0x1b   :  { %p98_p12 = pnand %p97_p11, %p91_p8 }
  0x20   :  { %v65_v5 = vpop.eup %64 }
  0x21   :  { %v67_v7 = vpop.eup %66  ;;  %v33_v8 = vadd.f32 1.0, %v65_v5 }
  0x22   :  { %v34_v10 = vadd.f32 1.0, %v67_v7 }
  0x23   :  { %v35_v11 = vmul.f32 %v33_v8, %v27_v4 }
  0x24   :  { %v36_v13 = vmul.f32 %v34_v10, %v28_v6 }
  0x25   :  { %v37_v14 = vmul.f32 %v35_v11, %v23_v9 }
  0x26   :  { %v38_v15 = vmul.f32 %v36_v13, %v24_v12 }
  0x27   :  { %39 = vst [vmem:[#allocation5] sm:$0xff] %v37_v14 }
  0x28   :  { %40 = vst [vmem:[#allocation5 + $0x8] sm:$0xff] %v38_v15 }
  0x29   :  { %101 = shalt.err (!%p98_p12)
}
  0x2a   :  { %s102_s24 = scalar_lea.hbm %s157_s1, 256 }
  0x2b   :  { %p103_p13 = scmp.ne.s32.totalorder %s157_s1, %s102_s24  ;;  %p106_p0 = scmp.lt.u32.totalorder %s102_s24, %s157_s1 }
  0x2d   :  { %p108_p1 = pnand %p106_p0, %p103_p13 }
  0x2f   :  { %111 = shalt.err (!%p108_p1)
}
  0x30   :  { %s120_s29 = smov 128   ;;  %s121_s30 = smov 8  }
  0x31   :  { %52 = dma.vmem_to_hbm [thread:$0]  %s47_s21, 256, %s157_s1, [#allocation4], %s120_s29, %s120_s29, %s121_s30  }
  0x32   :  { %114 = dma.done.wait [#allocation4], 256  }
  0x33   :  { %115 = vsyncadd [#allocation4], 4294967040 }
  0x34   :  { %56 = vsyncpa [#allocation3], 1 }
  0x35   :  { %57 = vsyncpa [#allocation4], 1 }

</bundles_post_ra>
